<compile_context>
chip_gen: v7x
topology: tpu7x:2x2x1
jax: 0.10.0
libtpu: 0.0.40
codegen_flags: <defaults>
</compile_context>

<pallas_src>
import functools
import math

import jax
import jax.numpy as jnp
from jax.experimental import pallas as pl
from jax.experimental.pallas import tpu as pltpu


def _round_up(x, m):
    return (x + m - 1) // m * m


def _k3_extra_for(c_in, k, sub=32):
    """Extra zero kernel-positions so C_in*(k^3+extra) is a multiple of `sub` (bf16 pack)."""
    step = sub // math.gcd(c_in, sub)
    return _round_up(k * k * k, step) - k * k * k


# ----------------------------- im2col (wrapper-side XLA glue) -----------------------------
def _im2col_3d(x, k, stride, pad, k3_extra, *, batch_on_lanes):
    """x: (B, C, D, H, W).

    Emits K-padded patches directly (K ordering = (C, kernel-position), with k3_extra
    zero positions appended per channel; the conv weight is padded identically).

    batch_on_lanes=False -> (B, Kp, P)      (one lane-dense (Kp, P) slab per sample)
    batch_on_lanes=True  -> (Kp, B*P)       (batch*spatial folded onto the lane axis)
    """
    B, C, D, H, W = x.shape
    xp = jnp.pad(x, ((0, 0), (0, 0), (pad, pad), (pad, pad), (pad, pad)))
    Do = (D + 2 * pad - k) // stride + 1
    Ho = (H + 2 * pad - k) // stride + 1
    Wo = (W + 2 * pad - k) // stride + 1
    cols = []
    for kd in range(k):
        for kh in range(k):
            for kw in range(k):
                cols.append(xp[:, :,
                               kd:kd + Do * stride:stride,
                               kh:kh + Ho * stride:stride,
                               kw:kw + Wo * stride:stride])
    if k3_extra:
        cols.extend([jnp.zeros_like(cols[0])] * k3_extra)
    patches = jnp.stack(cols, axis=2)                # (B, C, k3p, Do, Ho, Wo)
    k3p = k * k * k + k3_extra
    P = Do * Ho * Wo
    if batch_on_lanes:
        patches = patches.transpose(1, 2, 0, 3, 4, 5).reshape(C * k3p, B * P)
    else:
        patches = patches.reshape(B, C * k3p, P)
    return patches, (Do, Ho, Wo)


def _pad_conv_weight(weight, k3_extra):
    """(C_out, C_in, k, k, k) -> (C_out, C_in*(k^3+k3_extra)), padded like the patches."""
    C_out, C_in, k, _, _ = weight.shape
    w = weight.reshape(C_out, C_in, k * k * k)
    if k3_extra:
        w = jnp.pad(w, ((0, 0), (0, 0), (0, k3_extra)))
    return w.reshape(C_out, C_in * (k * k * k + k3_extra))


# ----------------------------- DiscriminatorBlock kernels -----------------------------
def _block_kernel_sample(p_ref, w_ref, b_ref, o_ref, *, eps):
    """One sample per grid step.  p:(Kp,P) bf16, w:(C_out,Kp) bf16, b:(C_out,1) f32."""
    x = jnp.dot(w_ref[...], p_ref[...], preferred_element_type=jnp.float32)  # (C_out, P)
    x = x + b_ref[...]
    # torch.layer_norm over (C, D, H, W) of this sample; two-pass stats in f32.
    n = x.size
    mean = jnp.sum(x) / n
    xc = x - mean
    var = jnp.sum(xc * xc) / n
    y = xc * jax.lax.rsqrt(var + eps)
    o_ref[...] = jnp.maximum(y, 0.0).astype(o_ref.dtype)


def _block_kernel_batch_lanes(p_ref, w_ref, b_ref, o_ref, *, eps, batch, p_per):
    """Whole batch in one step, batch folded into lanes.

    p:(Kp, B*P) bf16, w:(C_out, Kp) bf16, b:(C_out, 1) f32, o:(C_out, B*P) bf16.
    Per-sample layer-norm stats via masked lane reductions (two-pass).
    """
    x = jnp.dot(w_ref[...], p_ref[...], preferred_element_type=jnp.float32)  # (C_out, B*P)
    x = x + b_ref[...]
    c_out, bp = x.shape
    lane = jax.lax.broadcasted_iota(jnp.int32, (c_out, bp), 1)
    sample = lane // p_per
    n = c_out * p_per
    mean_full = jnp.zeros_like(x)
    for b in range(batch):                       # static, tiny unroll
        m = sample == b
        mean_b = jnp.sum(jnp.where(m, x, 0.0)) / n
        mean_full = mean_full + jnp.where(m, mean_b, 0.0)
    xc = x - mean_full
    inv_full = jnp.zeros_like(x)
    for b in range(batch):
        m = sample == b
        var_b = jnp.sum(jnp.where(m, xc * xc, 0.0)) / n
        inv_full = inv_full + jnp.where(m, jax.lax.rsqrt(var_b + eps), 0.0)
    y = xc * inv_full
    o_ref[...] = jnp.maximum(y, 0.0).astype(o_ref.dtype)


def discriminator_block(x, weight, bias, *, stride, padding, eps=1e-5,
                        batch_on_lanes=False):
    """Fused Conv3d + layer_norm(C,D,H,W) + ReLU.  Returns (B, C_out, Do, Ho, Wo) bf16."""
    B = x.shape[0]
    C_out, C_in, k, _, _ = weight.shape
    k3e = _k3_extra_for(C_in, k)                         # K padded to a 32-multiple, not 128
    patches, (Do, Ho, Wo) = _im2col_3d(x, k, stride, padding, k3e,
                                       batch_on_lanes=batch_on_lanes)
    Kp = C_in * (k * k * k + k3e)
    P = Do * Ho * Wo

    patches = patches.astype(jnp.bfloat16)
    w2d = _pad_conv_weight(weight, k3e).astype(jnp.bfloat16)
    b2d = bias.reshape(C_out, 1).astype(jnp.float32)

    if batch_on_lanes:
        # Single kernel step: (C_out, B*P) output is lane-dense (B*P = 128 for block 2),
        # no per-grid-step overhead, per-sample LN via masked lane reductions.
        out = pl.pallas_call(
            functools.partial(_block_kernel_batch_lanes, eps=eps, batch=B, p_per=P),
            out_shape=jax.ShapeDtypeStruct((C_out, B * P), jnp.bfloat16),
        )(patches, w2d, b2d)
        return out.reshape(C_out, B, Do, Ho, Wo).transpose(1, 0, 2, 3, 4)

    cost = pl.CostEstimate(
        flops=2 * B * C_out * Kp * P,
        transcendentals=0,
        bytes_accessed=(B * Kp * P * 2 + C_out * Kp * 2 + C_out * 4 + B * C_out * P * 2),
    )
    out = pl.pallas_call(
        functools.partial(_block_kernel_sample, eps=eps),
        out_shape=jax.ShapeDtypeStruct((B, C_out, P), jnp.bfloat16),
        grid_spec=pltpu.PrefetchScalarGridSpec(
            num_scalar_prefetch=0,
            grid=(B,),
            in_specs=[
                pl.BlockSpec((None, Kp, P), lambda b: (b, 0, 0)),   # one sample's patches
                pl.BlockSpec((C_out, Kp), lambda b: (0, 0)),        # shared conv weight
                pl.BlockSpec((C_out, 1), lambda b: (0, 0)),         # shared conv bias
            ],
            out_specs=pl.BlockSpec((None, C_out, P), lambda b: (b, 0, 0)),
        ),
        compiler_params=pltpu.CompilerParams(dimension_semantics=("parallel",)),
        cost_estimate=cost,
    )(patches, w2d, b2d)
    # (B, C_out, P) -> NCDHW is a pure reshape in this layout.
    return out.reshape(B, C_out, Do, Ho, Wo)


# ------------------- Fused last block (1x1x1 conv output) + Linear(100,1) + Sigmoid -------------------
def _head_kernel(x_ref, w3_ref, b3_ref, w2_ref, b2_ref, o_ref, *, eps, n_feat):
    """x:(B,K3) bf16, w3:(K3,Cp) bf16, b3:(1,Cp) f32, w2:(1,Cp) f32, b2:(1,1) f32, o:(B,1) f32."""
    z = jnp.dot(x_ref[...], w3_ref[...], preferred_element_type=jnp.float32) + b3_ref[...]
    bq, cp = z.shape
    lane = jax.lax.broadcasted_iota(jnp.int32, (bq, cp), 1)
    valid = lane < n_feat                                   # ignore padded feature lanes
    zm = jnp.where(valid, z, 0.0)
    mean = jnp.sum(zm, axis=-1, keepdims=True) / n_feat      # per-sample LN over the 100 feats
    zc = jnp.where(valid, z - mean, 0.0)
    var = jnp.sum(zc * zc, axis=-1, keepdims=True) / n_feat
    y = jnp.maximum(zc * jax.lax.rsqrt(var + eps), 0.0)      # ReLU
    # Linear(100, 1) as a lane reduction (avoids an N=1 MXU matmul) + sigmoid.
    logits = jnp.sum(y * w2_ref[...], axis=-1, keepdims=True) + b2_ref[...]
    o_ref[...] = (1.0 / (1.0 + jnp.exp(-logits))).astype(o_ref.dtype)


def fused_last_block_and_mlp(x, conv_w, conv_b, mlp_w, mlp_b, *, eps=1e-5):
    """Last DiscriminatorBlock (kernel == spatial extent, pad 0 -> 1x1x1 output) fused with
    view + Linear(100,1) + Sigmoid.  x: (B, C_in, D, H, W) bf16/f32.  Returns (B, 1) f32."""
    B = x.shape[0]
    C_out, C_in, kd, kh, kw = conv_w.shape
    assert x.shape[1:] == (C_in, kd, kh, kw), "last block must reduce spatial dims to 1x1x1"
    K = C_in * kd * kh * kw                                  # 1024: already lane/sublane aligned
    Cp = _round_up(C_out, 128)                               # 100 -> 128 features on lanes

    x2d = x.reshape(B, K).astype(jnp.bfloat16)               # NCDHW flatten == the conv's im2col
    w3 = jnp.pad(conv_w.reshape(C_out, K).T, ((0, 0), (0, Cp - C_out))).astype(jnp.bfloat16)
    b3 = jnp.pad(conv_b, (0, Cp - C_out)).reshape(1, Cp).astype(jnp.float32)
    w2 = jnp.pad(mlp_w.reshape(1, C_out), ((0, 0), (0, Cp - C_out))).astype(jnp.float32)
    b2 = mlp_b.reshape(1, 1).astype(jnp.float32)

    return pl.pallas_call(
        functools.partial(_head_kernel, eps=eps, n_feat=C_out),
        out_shape=jax.ShapeDtypeStruct((B, 1), jnp.float32),
    )(x2d, w3, b3, w2, b2)


# ----------------------------- Full Discriminator forward -----------------------------
def discriminator_forward(x, params):
    blocks = params["blocks"]
    for i, (w, b, stride, pad) in enumerate(blocks[:-1]):
        # Block 1: per-sample grid (P=512 lane-dense, parallel over batch for v7x's 2 TCs).
        # Later blocks: whole batch folded onto lanes (lane-dense output, one kernel step).
        x = discriminator_block(x, w, b, stride=stride, padding=pad,
                                batch_on_lanes=(i > 0))
    w, b, stride, pad = blocks[-1]
    assert pad == 0, "fused head expects the last conv to be a valid (pad=0) full-extent conv"
    return fused_last_block_and_mlp(x, w, b, params["mlp_w"], params["mlp_b"])


if __name__ == "__main__":
    key = jax.random.PRNGKey(0)
    keys = jax.random.split(key, 16)

    # Config chosen so the flattened conv features are exactly 100 (the module's
    # hard-coded nn.Linear(100, 1)):
    #   input (B, 1, 8, 8, 8)
    #   block 1: 1 ->   8, k=3, s=1, p=1  -> (B,   8, 8, 8, 8)   P = 512 (lane-dense)
    #   block 2: 8 ->  16, k=3, s=2, p=1  -> (B,  16, 4, 4, 4)   B*P = 128 (lane-dense)
    #   block 3: 16-> 100, k=4, s=1, p=0  -> (B, 100, 1, 1, 1)   fused with the MLP head
    #   flatten -> (B, 100) -> Linear(100, 1) -> Sigmoid
    B = 2
    D = H = W = 8
    channel_sizes = [8, 16, 100]
    kernel_sizes = [3, 3, 4]
    stride_sizes = [1, 2, 1]
    padding_sizes = [1, 1, 0]

    x = jax.random.normal(keys[0], (B, 1, D, H, W), dtype=jnp.float32)

    blocks = []
    in_c = 1
    ki = 1
    for out_c, ksz, s, p in zip(channel_sizes, kernel_sizes, stride_sizes, padding_sizes):
        w = 0.1 * jax.random.normal(keys[ki], (out_c, in_c, ksz, ksz, ksz), dtype=jnp.float32)
        b = 0.1 * jax.random.normal(keys[ki + 1], (out_c,), dtype=jnp.float32)
        blocks.append((w, b, s, p))
        in_c = out_c
        ki += 2

    mlp_w = 0.1 * jax.random.normal(keys[ki], (1, 100), dtype=jnp.float32)
    mlp_b = 0.1 * jax.random.normal(keys[ki + 1], (1,), dtype=jnp.float32)
    params = {"blocks": blocks, "mlp_w": mlp_w, "mlp_b": mlp_b}

    out = discriminator_forward(x, params)
    jax.block_until_ready(out)
    assert out.shape == (B, 1)
    assert bool(jnp.isfinite(out).all())
    assert bool(((out > 0.0) & (out < 1.0)).all())
    print("KERNEL_OK")
</pallas_src>

<mosaic_0001>
module attributes {stable_mosaic.version = 11 : i64} {
  func.func @_block_kernel_sample(%arg0: i32, %arg1: memref<1x32x512xbf16, #tpu.memory_space<vmem>>, %arg2: memref<8x32xbf16, #tpu.memory_space<vmem>>, %arg3: memref<8x1xf32, #tpu.memory_space<vmem>>, %arg4: memref<1x8x512xbf16, #tpu.memory_space<vmem>>) attributes {dimension_semantics = [#tpu.dimension_semantics<parallel>], iteration_bounds = array<i64: 2>, scalar_prefetch = 0 : i64, scratch_operands = 0 : i64, tpu.core_type = #tpu.core_type<tc>, window_params = [{transform_indices = @transform_0, window_bounds = array<i64: 1, 32, 512>}, {pipeline_mode = #tpu.pipeline_mode<synchronous>, transform_indices = @transform_1, window_bounds = array<i64: 8, 32>}, {pipeline_mode = #tpu.pipeline_mode<synchronous>, transform_indices = @transform_2, window_bounds = array<i64: 8, 1>}, {transform_indices = @transform_3, window_bounds = array<i64: 1, 8, 512>}]} {
    %c0 = arith.constant 0 : index
    %c0_0 = arith.constant 0 : index
    %0 = vector.load %arg2[%c0, %c0_0] : memref<8x32xbf16, #tpu.memory_space<vmem>>, vector<8x32xbf16>
    %c0_1 = arith.constant 0 : index
    %c0_2 = arith.constant 0 : index
    %c0_3 = arith.constant 0 : index
    %1 = vector.load %arg1[%c0_1, %c0_2, %c0_3] : memref<1x32x512xbf16, #tpu.memory_space<vmem>>, vector<1x32x512xbf16>
    %2 = vector.shape_cast %1 : vector<1x32x512xbf16> to vector<32x512xbf16>
    %cst = arith.constant dense<0.000000e+00> : vector<8x512xf32>
    %3 = tpu.matmul %0, %2, %cst {dimension_numbers = #tpu.dot_dimension_numbers<[1], [0], [0], [1], [0, 0, 1, 1], [], []>} : vector<8x32xbf16>, vector<32x512xbf16>, vector<8x512xf32> -> vector<8x512xf32>
    %c0_4 = arith.constant 0 : index
    %c0_5 = arith.constant 0 : index
    %4 = vector.load %arg3[%c0_4, %c0_5] : memref<8x1xf32, #tpu.memory_space<vmem>>, vector<8x1xf32>
    %5 = vector.broadcast %4 : vector<8x1xf32> to vector<8x512xf32>
    %6 = arith.addf %3, %5 : vector<8x512xf32>
    %7 = vector.shape_cast %6 : vector<8x512xf32> to vector<1x8x512xf32>
    %cst_6 = arith.constant dense<0.000000e+00> : vector<1xf32>
    %8 = vector.multi_reduction <add>, %7, %cst_6 [1, 2] : vector<1x8x512xf32> to vector<1xf32>
    %9 = vector.shape_cast %8 : vector<1xf32> to vector<1x1x1xf32>
    %10 = vector.extract %9[0, 0, 0] : f32 from vector<1x1x1xf32>
    %cst_7 = arith.constant 4.096000e+03 : f32
    %11 = arith.divf %10, %cst_7 : f32
    %12 = vector.broadcast %11 : f32 to vector<8x512xf32>
    %13 = arith.subf %6, %12 : vector<8x512xf32>
    %14 = arith.mulf %13, %13 : vector<8x512xf32>
    %15 = vector.shape_cast %14 : vector<8x512xf32> to vector<1x8x512xf32>
    %cst_8 = arith.constant dense<0.000000e+00> : vector<1xf32>
    %16 = vector.multi_reduction <add>, %15, %cst_8 [1, 2] : vector<1x8x512xf32> to vector<1xf32>
    %17 = vector.shape_cast %16 : vector<1xf32> to vector<1x1x1xf32>
    %18 = vector.extract %17[0, 0, 0] : f32 from vector<1x1x1xf32>
    %cst_9 = arith.constant 4.096000e+03 : f32
    %19 = arith.divf %18, %cst_9 : f32
    %cst_10 = arith.constant 9.99999974E-6 : f32
    %20 = arith.addf %19, %cst_10 : f32
    %21 = math.rsqrt %20 : f32
    %22 = vector.broadcast %21 : f32 to vector<8x512xf32>
    %23 = arith.mulf %13, %22 : vector<8x512xf32>
    %cst_11 = arith.constant 0.000000e+00 : f32
    %24 = vector.broadcast %cst_11 : f32 to vector<8x512xf32>
    %25 = arith.maximumf %23, %24 : vector<8x512xf32>
    %26 = arith.truncf %25 : vector<8x512xf32> to vector<8x512xbf16>
    %c0_12 = arith.constant 0 : index
    %c0_13 = arith.constant 0 : index
    %c0_14 = arith.constant 0 : index
    %27 = vector.load %arg4[%c0_12, %c0_13, %c0_14] : memref<1x8x512xbf16, #tpu.memory_space<vmem>>, vector<1x8x512xbf16>
    %28 = vector.shape_cast %27 : vector<1x8x512xbf16> to vector<8x512xbf16>
    %29 = vector.shape_cast %26 : vector<8x512xbf16> to vector<1x8x512xbf16>
    tpu.vector_store %arg4[%c0_12, %c0_13, %c0_14], %29 {strides = array<i32>} : memref<1x8x512xbf16, #tpu.memory_space<vmem>>, vector<1x8x512xbf16>,
    return
  }
  func.func @transform_0(%arg0: i32) -> (i32, i32, i32) {
    %c0_i32 = arith.constant 0 : i32
    %c0_i32_0 = arith.constant 0 : i32
    %c0_i32_1 = arith.constant 0 : i32
    return %arg0, %c0_i32, %c0_i32_0 : i32, i32, i32
  }
  func.func @transform_1(%arg0: i32) -> (i32, i32) {
    %c0_i32 = arith.constant 0 : i32
    %c0_i32_0 = arith.constant 0 : i32
    %c0_i32_1 = arith.constant 0 : i32
    return %c0_i32, %c0_i32_0 : i32, i32
  }
  func.func @transform_2(%arg0: i32) -> (i32, i32) {
    %c0_i32 = arith.constant 0 : i32
    %c0_i32_0 = arith.constant 0 : i32
    %c0_i32_1 = arith.constant 0 : i32
    return %c0_i32, %c0_i32_0 : i32, i32
  }
  func.func @transform_3(%arg0: i32) -> (i32, i32, i32) {
    %c0_i32 = arith.constant 0 : i32
    %c0_i32_0 = arith.constant 0 : i32
    %c0_i32_1 = arith.constant 0 : i32
    return %arg0, %c0_i32, %c0_i32_0 : i32, i32, i32
  }
}

</mosaic_0001>

<bundles_post_ra>
// kernel: tpu_custom_call.1
= control target key start
LH: loop header
LB: loop body
LE: loop exit
PB: predicated region body
PF: predicated region fallthrough
CT: control target
= control target key end

     0   :  { %8 = vsyncpa [#allocation3], 0  ;;  %s876_s0 = inlined_call_operand.hbm [shape: bf16[2,32,512], index: 0, kind: input, shape index: {}]   ;;  %s877_s1 = inlined_call_operand.vmem [shape: bf16[8,32], index: 1, kind: input, shape index: {}]   ;;  %s878_s2 = inlined_call_operand.vmem [shape: f32[8,1], index: 2, kind: input, shape index: {}]   ;;  %s879_s3 = inlined_call_operand.hbm [shape: bf16[2,8,512], index: 3, kind: output, shape index: {}]  }
   0x1   :  { %10 = vsyncpa [#allocation3 + $0x1], 0 }
   0x2   :  { %11 = vsyncpa [#allocation4], 0 }
   0x3   :  { %13 = vsyncpa [#allocation4 + $0x1], 0  ;;  %s709_s12 = smov 0   ;;  %s711_s13 = smov 0  }
   0x4   :  { %s713_s14 = smov 0   ;;  %s715_s15 = smov 0  }
   0x5 LB: > { %s730_s16 = sadd.s32 4294967295, %s682_s15   ;;  %s486_s17 = sadd.s32 4294967294, %s682_s15   ;;  %s682_s15 = sphi %s715_s15, %s892_s15   ;;  %s678_s14 = sphi %s713_s14, %s891_s14   ;;  %s674_s13 = sphi %s711_s13, %s890_s13   ;;  %s670_s12 = sphi %s709_s12, %s889_s12  }
   0x6   : > { %s734_s18 = sadd.s32 1, %s682_s15   ;;  %s26_s19 = sadd.s32 1, %s678_s14 }
   0x7   : > { %s23_s20 = ssub.s32 %s682_s15, %s734_s18  ;;  %p33_p0 = scmp.ne.s32.totalorder %s678_s14, %s674_s13 }
   0x8   : > { %p24_p1 = scmp.eq.s32.totalorder %s23_s20, 0  ;;  %p34_p2 = scmp.eq.s32.totalorder %s682_s15, 0 }
   0x9   : > { %p39_p3 = scmp.ne.s32.totalorder %s674_s13, %s670_s12  ;;  %p40_p4 = scmp.eq.s32.totalorder %s730_s16, 0 }
   0xa   : > { %s746_s21 = scalar_select %p24_p1, %s678_s14, %s26_s19  }
   0xb   : > { %p748_p5 = por %p34_p2, %p33_p0  ;;  %p752_p6 = por %p40_p4, %p39_p3 }
   0xc   : > { %p105_p7 = scmp.eq.s32.totalorder %s730_s16, 1  ;;  %p111_p8 = scmp.eq.s32.totalorder %s486_s17, 1 }
   0xd   : > { %p534_p10 = scmp.lt.s32.totalorder %s682_s15, 2  ;;  %s137_s26 = sand.u32 1, %s678_s14  }
   0xe   : > { %p759_p11 = por %p105_p7, %p33_p0  ;;  %p763_p12 = por %p111_p8, %p39_p3 }
   0xf   : > { %s512_s27 = sshll.u32 %s682_s15, 10  ;;  %s489_s28 = sshll.u32 %s137_s26, 6 }
  0x10   : > { %s883_s24 = scalar_select %p759_p11, 1, 0 }
  0x11   : > { %s884_s25 = scalar_select %p763_p12, 1, 0 }
  0x12   : > { %s772_s4 = scalar_lea.hbm %s876_s0, %s512_s27  ;;  %s141_s5 = scalar_lea.vmem [#allocation2], %s489_s28 }
  0x13   : > { %s148_s6 = sshll.u32 %s141_s5, 4  ;;  %p776_p13 = pnand %p534_p10, %p748_p5  ;;  %s780_s6 = int_to_ptr.vmem [resolvable:$true] %s148_s6 }
  0x14   : > { %s782_s8 = scalar_lea.sflag [#allocation3], %s137_s26  ;;  %s586_s9 = scalar_lea.hbm %s772_s4, 1024 }
  0x15   : > { %p587_p0 = scmp.ne.s32.totalorder %s772_s4, %s586_s9  ;;  %p588_p1 = pneg %p776_p13 }
  0x16   : > { %s591_s17 = scalar_lea.hbm %s876_s0, 2048  ;;  %p592_p4 = scmp.lt.u32.totalorder %s772_s4, %s876_s0 }
  0x17   : > { %p589_p2 = pnand %p588_p1, %p587_p0  ;;  %p593_p5 = scmp.lt.u32.totalorder %s591_s17, %s586_s9 }
  0x18   : > { %p595_p8 = scmp.lt.u32.totalorder %s586_s9, %s772_s4 }
  0x19   : > { %p590_p3 = pneg %p589_p2  ;;  %p594_p7 = por %p593_p5, %p592_p4 }
  0x1b   : > { %p596_p10 = por %p595_p8, %p594_p7 }
  0x1d   : > { %p597_p9 = pnand %p596_p10, %p590_p3 }
  0x1f   : > { %600 = shalt.err (!%p597_p9)
}
  0x20   : > { %s601_s22 = scalar_lea.vmem %s780_s6, 1024  ;;  %s684_s26 = smov [#allocation2]  }
  0x21   : > { %p602_p0 = scmp.ne.s32.totalorder %s780_s6, %s601_s22  ;;  %s606_s27 = sshll.u32 %s684_s26, 4  ;;  %s607_s27 = int_to_ptr.vmem [resolvable:$false] %s606_s27 }
  0x22   : > { %s608_s28 = scalar_lea.vmem %s607_s27, 2048  ;;  %p609_p11 = scmp.lt.s32.totalorder %s780_s6, %s607_s27 }
  0x23   : > { %p604_p2 = pnand %p602_p0, %p588_p1  ;;  %p610_p4 = scmp.lt.s32.totalorder %s608_s28, %s601_s22 }
  0x25   : > { %p605_p12 = pneg %p604_p2  ;;  %p611_p5 = por %p610_p4, %p609_p11 }
  0x27   : > { %p612_p7 = pnand %p611_p5, %p605_p12 }
  0x29   : > { %615 = shalt.err (!%p612_p7)
}
  0x2a   : > { %s685_s29 = smov 256   ;;  %s686_s30 = smov 16  }
  0x2b   : > { %529 = dma.hbm_to_vmem [thread:$0]  (!%p776_p13), %s772_s4, 1024, %s780_s6, %s782_s8, %s685_s29, %s685_s29, %s686_s30  }
  0x2c   : > { %p492_p9 = scmp.ge.s32.totalorder %s682_s15, 1  ;;  %p156_p1 = scmp.lt.s32.totalorder %s682_s15, 3 }
  0x2e   : > { %p157_p3 = pnand %p492_p9, %p156_p1 }
  0x2f   : > { %s813_s5 = sand.u32 (!%p157_p3), 1, %s674_s13  }
  0x30   : > { %160 = sbr.rel (%p157_p3) target bundleno = 795 (0x31b), region = 32  ;;  %s493_s9 = sshll.u32 (!%p157_p3), %s813_s5, 6 }
  0x31   : > { %s163_s10 = scalar_lea.sflag (!%p157_p3), [#allocation3], %s813_s5  ;;  %s166_s11 = scalar_lea.vmem (!%p157_p3), [#allocation2], %s493_s9 }
  0x37   : > { %661 = dma.done.wait (%p752_p6), %s163_s10, 1024  }
  0x38   : > { %663 = vsyncadd (%p752_p6), %s163_s10, 4294966272  ;;  %v687_v0 = vmov 0   ;;  %v572_v1 = vld [vmem:[%s166_s11 + $0x4] ss:$16 sps:$4 sm:$0xff]   ;;  %v574_v2 = vld [vmem:[%s166_s11 + $0xc] ss:$16 sps:$4 sm:$0xff]  }
  0x39   : > { %281 = vmatprep.mubr.bf16.mxu0 %v687_v0  ;;  %322 = vmatprep.mubr.bf16.mxu1 %v687_v0  ;;  %v576_v3 = vld [vmem:[%s166_s11] ss:$16 sps:$4 sm:$0xff]   ;;  %v577_v4 = vld [vmem:[%s166_s11 + $0x8] ss:$16 sps:$4 sm:$0xff]   ;;  %v578_v5 = vld [vmem:[%s166_s11 + $0x24] ss:$16 sps:$4 sm:$0xff]  }
  0x3a   : > { %571 = vset.pattern.permute.xlu0 %v687_v0  ;;  %249 = vmatprep.subr.bf16.mxu0 %v572_v1  ;;  %v580_v6 = vld [vmem:[%s166_s11 + $0x2c] ss:$16 sps:$4 sm:$0xff]   ;;  %v582_v7 = vld [vmem:[%s166_s11 + $0x20] ss:$16 sps:$4 sm:$0xff]   ;;  %v583_v8 = vld [vmem:[%s166_s11 + $0x28] ss:$16 sps:$4 sm:$0xff]  }
  0x3b   : > { %290 = vmatprep.subr.bf16.mxu1 %v574_v2  ;;  %250 = vmatpush1.bf16.msra.mxu0 %v576_v3  ;;  %v199_v9 = vld [vmem:[%s878_s2] sm:$0xff]  ;;  %vm245_vm0 = vcmask 261120   ;;  %s494_s26 = sshll.u32 %s813_s5, 4  ;;  %s515_s28 = sshll.u32 %s730_s16, 8 }
  0x3c   : > { %291 = vmatpush1.bf16.msra.mxu1 %v577_v4  ;;  %251 = vmatprep.subr.bf16.mxu0 %v578_v5  ;;  %v190_v10 = vld [vmem:[%s877_s1] sm:$0xf]  ;;  %s188_s29 = scalar_lea.vmem [#allocation5], %s494_s26  ;;  %s832_s11 = scalar_lea.hbm %s879_s3, %s515_s28 }
  0x3d   : > { %292 = vmatprep.subr.bf16.mxu1 %v580_v6  ;;  %202 = vperm.xlu0 %571, %v199_v9   ;;  %s416_s30 = sshll.u32 %s188_s29, 4  ;;  %s402_s16 = scalar_lea.sflag [#allocation4], %s813_s5  ;;  %s834_s30 = int_to_ptr.vmem [resolvable:$true] %s416_s30 }
  0x3e   : > { %s616_s4 = scalar_lea.vmem %s834_s30, 256  ;;  %p886_p11 = scmp.ne.s32.totalorder %s883_s24, 0 }
  0x3f   : > { %252 = vmatpush1.bf16.msra.mxu0 %v582_v7  ;;  %p617_p6 = scmp.ne.s32.totalorder %s834_s30, %s616_s4  ;;  %s688_s23 = smov [#allocation5]  }
  0x40   : > { %293 = vmatpush1.bf16.msra.mxu1 %v583_v8  ;;  %s620_s6 = sshll.u32 %s688_s23, 4  ;;  %s621_s6 = int_to_ptr.vmem [resolvable:$false] %s620_s6 }
  0x41   : > { %p618_p12 = pnand %p617_p6, %p886_p11  ;;  %s622_s7 = scalar_lea.vmem %s621_s6, 512 }
  0x42   : > { %503 = vmatmul.mubr.msk.bf16.vlgmr.msra.gmra.mrb[0].mxu0 %vm245_vm0, %v190_v10  ;;  %p623_p8 = scmp.lt.s32.totalorder %s834_s30, %s621_s6  ;;  %p624_p10 = scmp.lt.s32.totalorder %s622_s7, %s616_s4 }
  0x43   : > { %504 = vmatmul.mubr.msk.bf16.vlgmr.msra.gmra.mrb[0].mxu1 %vm245_vm0, %v190_v10  ;;  %p619_p13 = pneg %p618_p12 }
  0x44   : > { %p625_p0 = por %p624_p10, %p623_p8 }
  0x46   : > { %p626_p2 = pnand %p625_p0, %p619_p13 }
  0xbc   : > { %v203_v11 = vpop.permute.xlu0 %202 }
 0x115   : > { %v283_v12 = vpop.f32.mrb[0].mxu0 }
 0x116   : > { %v324_v13 = vpop.f32.mrb[0].mxu1  ;;  %v284_v14 = vadd.f32 %v283_v12, %v203_v11  ;;  %v285_v15 = vpop.f32.mrb[1].mxu0 }
 0x117   : > { %v326_v16 = vpop.f32.mrb[1].mxu1  ;;  %v286_v17 = vadd.f32 %v285_v15, %v203_v11  ;;  %v287_v18 = vpop.f32.mrb[2].mxu0  ;;  %v325_v22 = vadd.f32 %v324_v13, %v203_v11 }
 0x118   : > { %v328_v19 = vpop.f32.mrb[2].mxu1  ;;  %v288_v20 = vpop.f32.mrb[3].mxu0  ;;  %v327_v24 = vadd.f32 %v326_v16, %v203_v11 }
 0x119   : > { %v329_v21 = vpop.f32.mrb[3].mxu1  ;;  %v331_v23 = vadd.f32 %v286_v17, %v284_v14 }
 0x11b   : > { %v332_v25 = vadd.f32 %v331_v23, %v325_v22 }
 0x11d   : > { %v333_v26 = vadd.f32 %v332_v25, %v327_v24 }
 0x11f   : > { %334 = vadd.xlane.f32.xlu0 %v333_v26 }
 0x1ac   : > { %v335_v27 = vpop.xlane.xlu0 %334 }
 0x1ad   : > { %v336_v28 = vrot.slane %v335_v27, 4 }
 0x1af   : > { %v337_v29 = vadd.f32 %v336_v28, %v335_v27 }
 0x1b1   : > { %v338_v30 = vrot.slane %v337_v29, 2 }
 0x1b3   : > { %v339_v31 = vadd.f32 %v338_v30, %v337_v29 }
 0x1b5   : > { %v340_v32 = vrot.slane %v339_v31, 1 }
 0x1b7   : > { %v341_v33 = vadd.f32 %v340_v32, %v339_v31 }
 0x1b9   : > { %516 = vpush %v341_v33 }
 0x1ea   : > { %s517_s8 = spop %516 }
 0x1eb   : > { %s345_s17 = smul.f32 0.00024414063, %s517_s8 }
 0x1ed   : > { %v346_v34 = vstv %s345_s17 }
 0x1ee   : > { %v347_v35 = vsub.f32 %v284_v14, %v346_v34  ;;  %v348_v36 = vsub.f32 %v286_v17, %v346_v34  ;;  %v349_v37 = vsub.f32 %v325_v22, %v346_v34  ;;  %v350_v38 = vsub.f32 %v327_v24, %v346_v34 }
 0x1f0   : > { %v351_v39 = vmul.f32 %v347_v35, %v347_v35  ;;  %v352_v40 = vmul.f32 %v348_v36, %v348_v36  ;;  %v353_v41 = vmul.f32 %v349_v37, %v349_v37  ;;  %v354_v43 = vmul.f32 %v350_v38, %v350_v38 }
 0x1f2   : > { %v355_v42 = vadd.f32 %v352_v40, %v351_v39 }
 0x1f4   : > { %v356_v44 = vadd.f32 %v355_v42, %v353_v41 }
 0x1f6   : > { %v357_v45 = vadd.f32 %v356_v44, %v354_v43 }
 0x1f8   : > { %358 = vadd.xlane.f32.xlu1 %v357_v45 }
 0x285   : > { %v359_v46 = vpop.xlane.xlu1 %358 }
 0x286   : > { %v360_v47 = vrot.slane %v359_v46, 4 }
 0x288   : > { %v361_v48 = vadd.f32 %v360_v47, %v359_v46 }
 0x28a   : > { %v362_v49 = vrot.slane %v361_v48, 2 }
 0x28c   : > { %v363_v50 = vadd.f32 %v362_v49, %v361_v48 }
 0x28e   : > { %v364_v51 = vrot.slane %v363_v50, 1 }
 0x290   : > { %v365_v52 = vadd.f32 %v364_v51, %v363_v50 }
 0x292   : > { %518 = vpush %v365_v52 }
 0x2c3   : > { %s519_s19 = spop %518 }
 0x2c4   : > { %s369_s20 = smul.f32 0.00024414063, %s519_s19 }
 0x2c6   : > { %s370_s22 = sadd.f32 1e-05, %s369_s20 }
 0x2c8   : > { %v371_v53 = vstv %s370_s22 }
 0x2c9   : > { %584 = vrsqrt.f32 %v371_v53 }
 0x2d3   : > { %v585_v54 = vpop.eup %584 }
 0x2d4   : > { %520 = vpush %v585_v54 }
 0x305   : > { %s521_s27 = spop %520 }
 0x306   : > { %v374_v55 = vstv %s521_s27 }
 0x307   : > { %v375_v56 = vmul.f32 %v374_v55, %v347_v35  ;;  %v376_v57 = vmul.f32 %v374_v55, %v348_v36  ;;  %v377_v58 = vmul.f32 %v374_v55, %v349_v37  ;;  %v378_v59 = vmul.f32 %v374_v55, %v350_v38 }
 0x309   : > { %v379_v60 = vmax.f32 %v375_v56, 0.0  ;;  %v380_v61 = vmax.f32 %v376_v57, 0.0  ;;  %v381_v62 = vmax.f32 %v377_v58, 0.0  ;;  %v382_v63 = vmax.f32 %v378_v59, 0.0 }
 0x30b   : > { %v513_v0 = vpack.c.bf16 %v380_v61, %v379_v60  ;;  %v514_v1 = vpack.c.bf16 %v382_v63, %v381_v62 }
 0x30d   : > { %399 = vst [vmem:[%s188_s29] sm:$0xff] %v513_v0  ;;  %400 = vst [vmem:[%s188_s29 + $0x8] sm:$0xff] %v514_v1 }
 0x30e   : > { %629 = shalt.err (!%p626_p2)
}
 0x30f   : > { %s630_s5 = scalar_lea.hbm %s832_s11, 256  ;;  %s634_s19 = scalar_lea.hbm %s879_s3, 512 }
 0x310   : > { %p631_p4 = scmp.ne.s32.totalorder %s832_s11, %s630_s5  ;;  %p635_p9 = scmp.lt.u32.totalorder %s832_s11, %s879_s3 }
 0x311   : > { %p636_p1 = scmp.lt.u32.totalorder %s634_s19, %s630_s5  ;;  %p638_p6 = scmp.lt.u32.totalorder %s630_s5, %s832_s11 }
 0x312   : > { %p632_p5 = pnand %p631_p4, %p886_p11 }
 0x313   : > { %p637_p3 = por %p636_p1, %p635_p9 }
 0x314   : > { %p633_p7 = pneg %p632_p5 }
 0x315   : > { %p639_p12 = por %p638_p6, %p637_p3 }
 0x317   : > { %p640_p13 = pnand %p639_p12, %p633_p7 }
 0x319   : > { %643 = shalt.err (!%p640_p13)
}
 0x31a   : > { %524 = dma.vmem_to_hbm [thread:$0]  (%p886_p11), %s834_s30, 256, %s832_s11, %s402_s16  }
 0x31b PF: > { %s428_s26 = sand.u32 1, %s670_s12   ;;  %p887_p8 = scmp.ne.s32.totalorder %s884_s25, 0 }
 0x31c   : > { %p888_p10 = scmp.ge.s32.totalorder %s682_s15, 2  ;;  %s429_s27 = scalar_lea.sflag [#allocation4], %s428_s26 }
 0x31e   : > { %p531_p0 = pnand %p888_p10, %p887_p8 }
 0x320   : > { %665 = dma.done.wait (!%p531_p0), %s429_s27, 256  }
 0x321   : > { %667 = vsyncadd (!%p531_p0), %s429_s27, 4294967040  ;;  %p16_p2 = scmp.ge.s32.totalorder %s734_s18, 4   ;;  %s889_s12 = smov %s674_s13 }
 0x322   : > { %s890_s13 = smov %s678_s14  ;;  %s891_s14 = smov %s746_s21 }
 0x323   : > { %s892_s15 = smov %s734_s18  ;;  %18 = sbr.rel (!%p16_p2) target bundleno = 5 (0x5), region = 77 }
 0x32a   :  { %434 = vsyncpa [#allocation3], 1 }
 0x32b   :  { %436 = vsyncpa [#allocation3 + $0x1], 1 }
 0x32c   :  { %437 = vsyncpa [#allocation4], 1 }
 0x32d   :  { %439 = vsyncpa [#allocation4 + $0x1], 1 }

</bundles_post_ra>
